<compile_context>
chip_gen: v6e
topology: v6e:2x2x1
jax: 0.10.0
libtpu: 0.0.40
codegen_flags: <defaults>
</compile_context>

<pallas_src>
import jax
import jax.numpy as jnp
from jax import lax
from jax.experimental import pallas as pl
from jax.experimental.pallas import tpu as pltpu


def _round_up(x, m):
    return ((x + m - 1) // m) * m


def mask_attention_kernel(q_ref, qt_ref, c_ref, o_ref):
    # Pin f32 matmuls to full precision so the kernel matches an f32 reference
    # bit-for-tolerance; for bf16 inputs the default (full-rate) path is used.
    mm_prec = lax.Precision.HIGHEST if q_ref.dtype == jnp.float32 else None

    q = q_ref[...]            # (TB, LqP, DP)   resident across the Lc axis
    qt = qt_ref[...]          # (TB, DP, LqP)   pre-transposed query
    c = c_ref[...]            # (TB, TLc, DP)

    # attention = bmm(context, query^T); qt is pre-transposed, so this is a
    # plain A·B contraction on the MXU (no per-step relayout of q).
    att = jnp.einsum('bcd,bdq->bcq', c, qt,
                     preferred_element_type=jnp.float32,
                     precision=mm_prec)                      # (TB, TLc, LqP)

    zero = att == 0.0
    neg_min = jnp.float32(jnp.finfo(jnp.float32).min)
    # Row max over the unmasked entries; stays finite even for fully-masked
    # rows, so exp() never sees -inf - (-inf) (no NaN to scrub).
    m = jnp.max(jnp.where(zero, neg_min, att), axis=-1, keepdims=True)
    # Unnormalized masked softmax: masked entries contribute exactly 0.
    e = jnp.where(zero, jnp.float32(0.0), jnp.exp(att - m))  # (TB, TLc, LqP)
    s = jnp.sum(e, axis=-1, keepdims=True)                   # (TB, TLc, 1)

    # Unnormalized context_vec; normalization is deferred to the (TLc, DP)
    # output side.  Fully-masked rows (s == 0) come out exactly zero, which is
    # torch's NaN -> 0 behavior.
    out = jnp.einsum('bcq,bqd->bcd', e.astype(q.dtype), q,
                     preferred_element_type=jnp.float32,
                     precision=mm_prec)                      # (TB, TLc, DP)
    inv = jnp.where(s == 0.0, jnp.float32(0.0),
                    pl.reciprocal(s, approx=True))
    o_ref[...] = (out * inv).astype(o_ref.dtype)


def _vmem_limits():
    """(vmem_limit_bytes, tile_budget_bytes), generation-aware."""
    cap = None
    try:
        cap = getattr(pltpu.get_tpu_info(), "vmem_capacity_bytes", None)
    except Exception:
        cap = None
    if not cap:
        cap = 64 * 1024 * 1024            # conservative: assume v7x per-TC VMEM
    if cap <= 64 * 1024 * 1024:           # v7x: 64 MiB physical per TensorCore
        return 32 * 1024 * 1024, 12 * 1024 * 1024
    return 64 * 1024 * 1024, 28 * 1024 * 1024   # v5e / v6e: 128 MiB physical


def _pick_tiles(B, LqP, Lc8, DP, itemsize, budget):
    """Choose (TB, TLc) so the per-grid-step VMEM working set stays in budget."""
    def step_bytes(TB, TLc):
        dbuf = 2                                             # Pallas double-buffers
        q_io = dbuf * TB * LqP * DP * itemsize * 2           # q and q_t tiles
        c_io = dbuf * TB * TLc * DP * itemsize
        o_io = dbuf * TB * TLc * DP * itemsize
        # live f32 intermediates: att + mask/e (~3x (TLc,LqP)) + (TLc,DP) acc
        inter = TB * TLc * (3 * LqP + DP) * 4
        return q_io + c_io + o_io + inter

    # Largest Lc tile (multiple of 8, capped) that fits with TB = 1.
    TLc = min(Lc8, 2048)
    while TLc > 8 and step_bytes(1, TLc) > budget:
        TLc = max(8, _round_up(TLc // 2, 8))
    # Grow the batch tile while the budget allows.
    TB = 1
    while TB < B and step_bytes(TB * 2, TLc) <= budget:
        TB *= 2
    TB = min(TB, B)
    # Keep >= 2 grid blocks when possible so both v7x TensorCores (and the
    # megacore "parallel" sharding on older gens) get work.
    if pl.cdiv(B, TB) * pl.cdiv(Lc8, TLc) < 2:
        if B > 1:
            TB = pl.cdiv(B, 2)
        elif Lc8 > 8:
            TLc = max(8, _round_up(pl.cdiv(Lc8, 2), 8))
    return TB, TLc


def mask_attention(query, context, *, mxu_dtype=None):
    """query: (B, Lq, D), context: (B, Lc, D) -> (B, Lc, D)."""
    B, Lq, D = query.shape
    Bc, Lc, Dc = context.shape
    assert Bc == B and Dc == D
    out_dtype = query.dtype

    if mxu_dtype is not None:
        # Opt-in MXU-input cast (e.g. jnp.bfloat16): zero rows stay exactly
        # zero, so the att == 0 masking semantics are preserved.
        query = query.astype(mxu_dtype)
        context = context.astype(mxu_dtype)
    itemsize = jnp.dtype(query.dtype).itemsize

    # Lane-density padding — exact under the att == 0 masking:
    #   * D -> mult. of 128: zero feature columns add 0 to every dot product;
    #     the padded output columns are sliced off.
    #   * Lq -> mult. of 128: zero query rows give exact-zero att columns,
    #     which the mask sends to -inf -> exp() == 0.
    LqP = _round_up(max(Lq, 1), 128)
    DP = _round_up(max(D, 1), 128)

    vmem_limit, budget = _vmem_limits()
    Lc8 = _round_up(max(Lc, 1), 8)
    TB, TLc = _pick_tiles(B, LqP, Lc8, DP, itemsize, budget)
    LcP = _round_up(Lc, TLc)
    BP = _round_up(B, TB)

    # Zero padding: padded context rows / batches are fully masked -> exact
    # zero outputs, sliced off below.
    q = jnp.pad(query, ((0, BP - B), (0, LqP - Lq), (0, DP - D)))
    c = jnp.pad(context, ((0, BP - B), (0, LcP - Lc), (0, DP - D)))
    qt = jnp.swapaxes(q, 1, 2)                      # (BP, DP, LqP), one-time

    grid = (BP // TB, LcP // TLc)
    cost = pl.CostEstimate(
        flops=2 * 2 * BP * LcP * LqP * DP,          # two batched matmuls
        transcendentals=BP * LcP * LqP,             # exp
        bytes_accessed=itemsize * (2 * BP * LqP * DP + 2 * BP * LcP * DP),
    )

    out = pl.pallas_call(
        mask_attention_kernel,
        out_shape=jax.ShapeDtypeStruct((BP, LcP, DP), out_dtype),
        grid_spec=pltpu.PrefetchScalarGridSpec(
            num_scalar_prefetch=0,
            grid=grid,
            in_specs=[
                # query tiles stay resident across the Lc axis
                pl.BlockSpec((TB, LqP, DP), lambda b, l: (b, 0, 0)),
                pl.BlockSpec((TB, DP, LqP), lambda b, l: (b, 0, 0)),
                pl.BlockSpec((TB, TLc, DP), lambda b, l: (b, l, 0)),
            ],
            out_specs=pl.BlockSpec((TB, TLc, DP), lambda b, l: (b, l, 0)),
        ),
        compiler_params=pltpu.CompilerParams(
            dimension_semantics=("parallel", "parallel"),
            vmem_limit_bytes=vmem_limit),
        cost_estimate=cost,
    )(q, qt, c)
    return out[:B, :Lc, :D]


def mask_attention_ref(query, context):
    """Pure-JAX reference mirroring the PyTorch forward (f32-accurate matmuls)."""
    prec = lax.Precision.HIGHEST
    att = jnp.einsum('bcd,bqd->bcq', context, query, precision=prec)
    masked = jnp.where(att == 0.0, -jnp.inf, att)
    attn = jax.nn.softmax(masked, axis=-1)
    attn = jnp.where(jnp.isnan(attn), 0.0, attn)
    return jnp.einsum('bcq,bqd->bcd', attn, query, precision=prec)


if __name__ == "__main__":
    key = jax.random.PRNGKey(0)

    def run_case(case_key, B, Lq, Lc, D):
        kq, kc = jax.random.split(case_key)
        query = jax.random.normal(kq, (B, Lq, D), dtype=jnp.float32)
        context = jax.random.normal(kc, (B, Lc, D), dtype=jnp.float32)
        # Exercise masking paths: zero query rows -> exact-zero attention
        # columns (masked to -inf); a zero context row -> fully masked row
        # (torch's NaN -> 0 path, here the s == 0 path).
        query = query.at[0, 0, :].set(0.0)
        query = query.at[B - 1, Lq - 1, :].set(0.0)
        context = context.at[B - 1, Lc // 2, :].set(0.0)

        out = jax.block_until_ready(mask_attention(query, context))
        ref = mask_attention_ref(query, context)
        assert out.shape == (B, Lc, D)
        # Tolerance covers the approximate (EUP) reciprocal on the softmax
        # denominator (~2^-12 relative) plus matmul pass-ordering differences.
        assert jnp.allclose(out, ref, atol=5e-3, rtol=5e-3), (
            f"mismatch vs reference: max abs err = {jnp.max(jnp.abs(out - ref))}")
        return jax.random.fold_in(case_key, 1)

    # Primary small case, plus one exercising batch / Lc padding paths.
    key = run_case(key, B=2, Lq=8, Lc=16, D=32)
    key = run_case(key, B=3, Lq=5, Lc=13, D=20)

    print("KERNEL_OK")
</pallas_src>

<mosaic_0001>
module attributes {stable_mosaic.version = 11 : i64} {
  func.func @mask_attention_kernel(%arg0: i32, %arg1: i32, %arg2: memref<1x128x128xf32, #tpu.memory_space<vmem>>, %arg3: memref<1x128x128xf32, #tpu.memory_space<vmem>>, %arg4: memref<1x16x128xf32, #tpu.memory_space<vmem>>, %arg5: memref<1x16x128xf32, #tpu.memory_space<vmem>>) attributes {dimension_semantics = [#tpu.dimension_semantics<parallel>, #tpu.dimension_semantics<parallel>], iteration_bounds = array<i64: 2, 1>, scalar_prefetch = 0 : i64, scratch_operands = 0 : i64, tpu.core_type = #tpu.core_type<tc>, window_params = [{transform_indices = @transform_0, window_bounds = array<i64: 1, 128, 128>}, {transform_indices = @transform_1, window_bounds = array<i64: 1, 128, 128>}, {transform_indices = @transform_2, window_bounds = array<i64: 1, 16, 128>}, {transform_indices = @transform_3, window_bounds = array<i64: 1, 16, 128>}]} {
    %c0 = arith.constant 0 : index
    %c0_0 = arith.constant 0 : index
    %c0_1 = arith.constant 0 : index
    %0 = vector.load %arg2[%c0, %c0_0, %c0_1] : memref<1x128x128xf32, #tpu.memory_space<vmem>>, vector<1x128x128xf32>
    %c0_2 = arith.constant 0 : index
    %c0_3 = arith.constant 0 : index
    %c0_4 = arith.constant 0 : index
    %1 = vector.load %arg3[%c0_2, %c0_3, %c0_4] : memref<1x128x128xf32, #tpu.memory_space<vmem>>, vector<1x128x128xf32>
    %c0_5 = arith.constant 0 : index
    %c0_6 = arith.constant 0 : index
    %c0_7 = arith.constant 0 : index
    %2 = vector.load %arg4[%c0_5, %c0_6, %c0_7] : memref<1x16x128xf32, #tpu.memory_space<vmem>>, vector<1x16x128xf32>
    "tpu.trace_start"() <{level = 10 : i32, message = "bcd,bdq->bcq"}> : () -> ()
    %cst = arith.constant dense<0.000000e+00> : vector<1x16x128xf32>
    %3 = tpu.matmul %2, %1, %cst {dimension_numbers = #tpu.dot_dimension_numbers<[2], [1], [1], [2], [0, 0, 0, 1, 1, 2], [0], [0]>, precision = #tpu.contract_precision<fp32>} : vector<1x16x128xf32>, vector<1x128x128xf32>, vector<1x16x128xf32> -> vector<1x16x128xf32>
    %cst_8 = arith.constant 0.000000e+00 : f32
    "tpu.trace_stop"() : () -> ()
    %4 = vector.broadcast %cst_8 : f32 to vector<1x16x128xf32>
    %5 = arith.cmpf oeq, %3, %4 : vector<1x16x128xf32>
    %cst_9 = arith.constant -3.40282347E+38 : f32
    %6 = vector.broadcast %cst_9 : f32 to vector<1x16x128xf32>
    %7 = arith.select %5, %6, %3 : vector<1x16x128xi1>, vector<1x16x128xf32>
    %cst_10 = arith.constant dense<0xFF800000> : vector<1x16xf32>
    %8 = vector.multi_reduction <maximumf>, %7, %cst_10 [2] : vector<1x16x128xf32> to vector<1x16xf32>
    %9 = vector.shape_cast %8 : vector<1x16xf32> to vector<1x16x1xf32>
    %10 = vector.broadcast %9 : vector<1x16x1xf32> to vector<1x16x128xf32>
    %11 = arith.subf %3, %10 : vector<1x16x128xf32>
    %12 = math.exp %11 : vector<1x16x128xf32>
    %cst_11 = arith.constant 0.000000e+00 : f32
    %13 = vector.broadcast %cst_11 : f32 to vector<1x16x128xf32>
    %14 = arith.select %5, %13, %12 : vector<1x16x128xi1>, vector<1x16x128xf32>
    %cst_12 = arith.constant dense<0.000000e+00> : vector<1x16xf32>
    %15 = vector.multi_reduction <add>, %14, %cst_12 [2] : vector<1x16x128xf32> to vector<1x16xf32>
    %16 = vector.shape_cast %15 : vector<1x16xf32> to vector<1x16x1xf32>
    "tpu.trace_start"() <{level = 10 : i32, message = "bcq,bqd->bcd"}> : () -> ()
    %cst_13 = arith.constant dense<0.000000e+00> : vector<1x16x128xf32>
    %17 = tpu.matmul %14, %0, %cst_13 {dimension_numbers = #tpu.dot_dimension_numbers<[2], [1], [1], [2], [0, 0, 0, 1, 1, 2], [0], [0]>, precision = #tpu.contract_precision<fp32>} : vector<1x16x128xf32>, vector<1x128x128xf32>, vector<1x16x128xf32> -> vector<1x16x128xf32>
    %cst_14 = arith.constant 0.000000e+00 : f32
    "tpu.trace_stop"() : () -> ()
    %18 = vector.broadcast %cst_14 : f32 to vector<1x16x1xf32>
    %19 = arith.cmpf oeq, %16, %18 : vector<1x16x1xf32>
    %20 = tpu.reciprocal %16 {approx = true} : vector<1x16x1xf32> -> vector<1x16x1xf32>
    %cst_15 = arith.constant 0.000000e+00 : f32
    %21 = vector.broadcast %cst_15 : f32 to vector<1x16x1xf32>
    %22 = arith.select %19, %21, %20 : vector<1x16x1xi1>, vector<1x16x1xf32>
    %23 = vector.broadcast %22 : vector<1x16x1xf32> to vector<1x16x128xf32>
    %24 = arith.mulf %17, %23 : vector<1x16x128xf32>
    %c0_16 = arith.constant 0 : index
    %c0_17 = arith.constant 0 : index
    %c0_18 = arith.constant 0 : index
    %25 = vector.load %arg5[%c0_16, %c0_17, %c0_18] : memref<1x16x128xf32, #tpu.memory_space<vmem>>, vector<1x16x128xf32>
    tpu.vector_store %arg5[%c0_16, %c0_17, %c0_18], %24 {strides = array<i32>} : memref<1x16x128xf32, #tpu.memory_space<vmem>>, vector<1x16x128xf32>,
    return
  }
  func.func @transform_0(%arg0: i32, %arg1: i32) -> (i32, i32, i32) {
    %c0_i32 = arith.constant 0 : i32
    %c0_i32_0 = arith.constant 0 : i32
    %c0_i32_1 = arith.constant 0 : i32
    return %arg0, %c0_i32, %c0_i32_0 : i32, i32, i32
  }
  func.func @transform_1(%arg0: i32, %arg1: i32) -> (i32, i32, i32) {
    %c0_i32 = arith.constant 0 : i32
    %c0_i32_0 = arith.constant 0 : i32
    %c0_i32_1 = arith.constant 0 : i32
    return %arg0, %c0_i32, %c0_i32_0 : i32, i32, i32
  }
  func.func @transform_2(%arg0: i32, %arg1: i32) -> (i32, i32, i32) {
    %c0_i32 = arith.constant 0 : i32
    %c0_i32_0 = arith.constant 0 : i32
    return %arg0, %arg1, %c0_i32 : i32, i32, i32
  }
  func.func @transform_3(%arg0: i32, %arg1: i32) -> (i32, i32, i32) {
    %c0_i32 = arith.constant 0 : i32
    %c0_i32_0 = arith.constant 0 : i32
    return %arg0, %arg1, %c0_i32 : i32, i32, i32
  }
}

</mosaic_0001>

<bundles_post_ra>
// kernel: tpu_custom_call.1
= control target key start
LH: loop header
LB: loop body
LE: loop exit
PB: predicated region body
PF: predicated region fallthrough
CT: control target
= control target key end

     0   :  { %s3765_s0 = inlined_call_operand.hbm [shape: f32[2,128,128], index: 0, kind: input, shape index: {}]   ;;  %s3766_s1 = inlined_call_operand.hbm [shape: f32[2,128,128], index: 1, kind: input, shape index: {}]   ;;  %s3767_s2 = inlined_call_operand.hbm [shape: f32[2,16,128], index: 2, kind: input, shape index: {}]   ;;  %s3768_s3 = inlined_call_operand.hbm [shape: f32[2,16,128], index: 3, kind: output, shape index: {}]  }
   0x1   :  { %3774 = sst [smem:[#allocation14_spill]] %s3765_s0 }
   0x2   :  { %3775 = sst [smem:[#allocation15_spill]] %s3766_s1 }
   0x3   :  { %8 = vsyncpa [#allocation3], 0 }
   0x4   :  { %10 = vsyncpa [#allocation3 + $0x1], 0 }
   0x5   :  { %11 = vsyncpa [#allocation6], 0 }
   0x6   :  { %13 = vsyncpa [#allocation6 + $0x1], 0 }
   0x7   :  { %14 = vsyncpa [#allocation4], 0 }
   0x8   :  { %16 = vsyncpa [#allocation4 + $0x1], 0  ;;  %s2809_s12 = smov 0   ;;  %s2811_s13 = smov 0  }
   0x9   :  { %s2813_s14 = smov 0   ;;  %s2815_s15 = smov 0  }
   0xa   :  { %s2817_s16 = smov 0   ;;  %s2819_s17 = smov 0  }
   0xb LB: > { %s2840_s18 = sadd.s32 4294967295, %s2779_s17   ;;  %s1865_s19 = sadd.s32 4294967294, %s2779_s17   ;;  %s2779_s17 = sphi %s2819_s17, %s22_s17   ;;  %s2775_s16 = sphi %s2817_s16, %s3796_s16   ;;  %s2771_s15 = sphi %s2815_s15, %s3795_s15   ;;  %s2767_s14 = sphi %s2813_s14, %s3794_s14   ;;  %s2763_s13 = sphi %s2811_s13, %s3793_s13   ;;  %s2759_s12 = sphi %s2809_s12, %s3792_s12  }
   0xc   : > { %s34_s20 = sadd.s32 1, %s2775_s16  ;;  %s41_s21 = sadd.s32 1, %s2767_s14 }
   0xd   : > { %p36_p0 = scmp.ge.s32.totalorder %s34_s20, 2  ;;  %p48_p1 = scmp.ne.s32.totalorder %s2767_s14, %s2763_s13 }
   0xe   : > { %p49_p2 = scmp.eq.s32.totalorder %s2779_s17, 0  ;;  %p54_p3 = scmp.ne.s32.totalorder %s2763_s13, %s2759_s12 }
   0xf   : > { %s3798_s20 = smov (%p36_p0, %s34_s20), 0  ;;  %p55_p5 = scmp.eq.s32.totalorder %s2840_s18, 0 }
  0x10   : > { %3776 = sst [smem:[#allocation12_spill]] %s3798_s20  ;;  %p2852_p4 = por %p49_p2, %p48_p1 }
  0x11   : > { %s38_s23 = ssub.s32 %s2775_s16, %s3798_s20  ;;  %p134_p6 = scmp.eq.s32.totalorder %s2840_s18, 1 }
  0x12   : > { %p39_p7 = scmp.eq.s32.totalorder %s38_s23, 0  ;;  %p2860_p8 = por %p55_p5, %p54_p3 }
  0x13   : > { %p2864_p9 = por %p134_p6, %p48_p1  ;;  %p140_p10 = scmp.eq.s32.totalorder %s1865_s19, 1 }
  0x14   : > { %s2869_s26 = scalar_select %p39_p7, %s2767_s14, %s41_s21  }
  0x15   : > { %p2871_p11 = por %p140_p10, %p54_p3  ;;  %p2549_p13 = scmp.lt.s32.totalorder %s2779_s17, 2 }
  0x16   : > { %3780 = sst [smem:[#allocation13_spill]] %s2869_s26  ;;  %s2878_s28 = sand.u32 1, %s2767_s14  }
  0x17   : > { %s1868_s29 = sshll.u32 %s2878_s28, 7  ;;  %s1887_s30 = sshll.u32 %s2775_s16, 11 }
  0x18   : > { %p2884_p0 = pnand %p2549_p13, %p2852_p4  ;;  %s181_s5 = sand.u32 1, %s2779_s17  }
  0x19   : > { %s3783_s1 = sld [smem:[#allocation15_spill]]  ;;  %s185_s9 = scalar_lea.vmem [#allocation5], %s1868_s29 }
  0x1a   : > { %s192_s10 = sshll.u32 %s185_s9, 4  ;;  %p1877_p1 = scmp.ge.s32.totalorder %s2779_s17, 1  ;;  %s193_s10 = int_to_ptr.vmem [resolvable:$true] %s192_s10 }
  0x1b   : > { %p223_p2 = scmp.lt.s32.totalorder %s2779_s17, 3  ;;  %s2898_s11 = scalar_lea.sflag [#allocation6], %s181_s5 }
  0x1c   : > { %p2613_p3 = pneg %p2884_p0  ;;  %s2624_s19 = scalar_lea.vmem %s193_s10, 2048 }
  0x1d   : > { %p2625_p4 = scmp.ne.s32.totalorder %s193_s10, %s2624_s19  ;;  %s2781_s21 = smov [#allocation5]  }
  0x1e   : > { %s2629_s22 = sshll.u32 %s2781_s21, 4  ;;  %s2630_s22 = int_to_ptr.vmem [resolvable:$false] %s2629_s22 }
  0x1f   : > { %s191_s8 = scalar_lea.hbm %s3783_s1, %s1887_s30  ;;  %p2627_p5 = pnand %p2625_p4, %p2613_p3 }
  0x20   : > { %s2631_s23 = scalar_lea.vmem %s2630_s22, 4096  ;;  %p2632_p7 = scmp.lt.s32.totalorder %s193_s10, %s2630_s22 }
  0x21   : > { %p2628_p6 = pneg %p2627_p5  ;;  %p2633_p10 = scmp.lt.s32.totalorder %s2631_s23, %s2624_s19 }
  0x23   : > { %p2634_p13 = por %p2633_p10, %p2632_p7 }
  0x25   : > { %p2635_p12 = pnand %p2634_p13, %p2628_p6 }
  0x27   : > { %2638 = shalt.err (!%p2635_p12)
}
  0x28   : > { %s3770_s6 = smov 128   ;;  %s2783_s5 = smov 8  }
  0x29   : > { %2541 = dma.hbm_to_vmem [thread:$0]  (!%p2884_p0), %s191_s8, 2048, %s193_s10, %s2898_s11, %s3770_s6, %s3770_s6, %s2783_s5  }
  0x2a   : > { %p2915_p4 = pnand %p1877_p1, %p223_p2  ;;  %s3785_s0 = sld [smem:[#allocation14_spill]] }
  0x2b   : > { %s164_s22 = scalar_lea.vmem [#allocation2], %s1868_s29  ;;  %s1874_s1 = sshll.u32 %s2878_s28, 4 }
  0x2c   : > { %s171_s23 = sshll.u32 %s164_s22, 4  ;;  %s161_s20 = scalar_lea.sflag [#allocation3], %s2878_s28  ;;  %s172_s23 = int_to_ptr.vmem [resolvable:$true] %s171_s23 }
  0x2d   : > { %s2652_s26 = scalar_lea.vmem %s172_s23, 2048  ;;  %s2784_s8 = smov [#allocation2]  }
  0x2e   : > { %p2653_p12 = scmp.ne.s32.totalorder %s172_s23, %s2652_s26  ;;  %s2657_s10 = sshll.u32 %s2784_s8, 4  ;;  %s2658_s10 = int_to_ptr.vmem [resolvable:$false] %s2657_s10 }
  0x2f   : > { %s2659_s6 = scalar_lea.vmem %s2658_s10, 4096  ;;  %p2660_p2 = scmp.lt.s32.totalorder %s172_s23, %s2658_s10 }
  0x30   : > { %s170_s21 = scalar_lea.hbm %s3785_s0, %s1887_s30  ;;  %p2655_p5 = pnand %p2653_p12, %p2613_p3 }
  0x31   : > { %p2661_p6 = scmp.lt.s32.totalorder %s2659_s6, %s2652_s26 }
  0x32   : > { %p2656_p1 = pneg %p2655_p5 }
  0x33   : > { %p2662_p7 = por %p2661_p6, %p2660_p2 }
  0x35   : > { %p2663_p10 = pnand %p2662_p7, %p2656_p1 }
  0x37   : > { %2666 = shalt.err (!%p2663_p10)
}
  0x38   : > { %s3786_s29 = smov 128   ;;  %s1889_s28 = sshll.u32 %s2775_s16, 8 }
  0x39   : > { %2538 = dma.hbm_to_vmem [thread:$0]  (!%p2884_p0), %s170_s21, 2048, %s172_s23, %s161_s20, %s3786_s29, %s3786_s29, %s2783_s5  }
  0x3a   : > { %s206_s30 = scalar_lea.vmem [#allocation7], %s1874_s1  ;;  %s214_s8 = scalar_lea.hbm %s3767_s2, %s1889_s28 }
  0x3b   : > { %s215_s9 = sshll.u32 %s206_s30, 4  ;;  %s2785_s6 = smov [#allocation7]   ;;  %s216_s9 = int_to_ptr.vmem [resolvable:$true] %s215_s9 }
  0x3c   : > { %s2680_s26 = scalar_lea.vmem %s216_s9, 256  ;;  %s2685_s10 = sshll.u32 %s2785_s6, 4  ;;  %s2686_s10 = int_to_ptr.vmem [resolvable:$false] %s2685_s10 }
  0x3d   : > { %p2681_p13 = scmp.ne.s32.totalorder %s216_s9, %s2680_s26  ;;  %s2687_s0 = scalar_lea.vmem %s2686_s10, 512 }
  0x3e   : > { %p2688_p1 = scmp.lt.s32.totalorder %s216_s9, %s2686_s10  ;;  %p2689_p2 = scmp.lt.s32.totalorder %s2687_s0, %s2680_s26 }
  0x3f   : > { %p2683_p12 = pnand %p2681_p13, %p2613_p3 }
  0x40   : > { %p2690_p6 = por %p2689_p2, %p2688_p1 }
  0x41   : > { %p2684_p5 = pneg %p2683_p12 }
  0x43   : > { %p2691_p7 = pnand %p2690_p6, %p2684_p5 }
  0x45   : > { %2694 = shalt.err (!%p2691_p7)
}
  0x46   : > { %2544 = dma.hbm_to_vmem [thread:$0]  (!%p2884_p0), %s214_s8, 256, %s216_s9, %s2898_s11, %s3786_s29, %s3786_s29, %s2783_s5  }
  0x47   : > { %227 = sbr.rel (%p2915_p4) target bundleno = 843 (0x34b), region = 32  ;;  %s2952_s1 = sand.u32 (!%p2915_p4), 1, %s2763_s13  }
  0x48   : > { %s1878_s0 = sshll.u32 (!%p2915_p4), %s2952_s1, 7  ;;  %s230_s20 = scalar_lea.sflag (!%p2915_p4), [#allocation3], %s2952_s1 }
  0x49   : > { %s2956_s21 = scalar_lea.vmem (!%p2915_p4), [#allocation2], %s1878_s0 }
  0x4c   : > { %2746 = dma.done.wait (%p2860_p8), %s230_s20, 2048  }
  0x4d   : > { %2748 = vsyncadd (%p2860_p8), %s230_s20, 4294965248  ;;  %s238_s4 = sand.u32 1, %s2840_s18   ;;  %s2963_s5 = scalar_lea.vmem [#allocation5], %s1878_s0 }
  0x4e   : > { %s239_s11 = scalar_lea.sflag [#allocation6], %s238_s4 }
  0x4f   : > { %2750 = dma.done.wait (%p2860_p8), %s239_s11, 2304  }
  0x50   : > { %2752 = vsyncadd (%p2860_p8), %s239_s11, 4294964992  ;;  %v317_v0 = vld [vmem:[%s2963_s5 + $0x78] sm:$0xff]  ;;  %v316_v1 = vld [vmem:[%s2963_s5 + $0x70] sm:$0xff]  ;;  %s1880_s18 = sshll.u32 %s2952_s1, 4  ;;  %s1890_s29 = sshll.u32 %s2771_s15, 8 }
  0x51   : > { %v315_v2 = vld [vmem:[%s2963_s5 + $0x68] sm:$0xff]  ;;  %v2972_v3 = vand.u32 4294901760, %v317_v0  ;;  %v2974_v4 = vand.u32 4294901760, %v316_v1  ;;  %v314_v6 = vld [vmem:[%s2963_s5 + $0x60] sm:$0xff]  ;;  %v313_v7 = vld [vmem:[%s2963_s5 + $0x58] sm:$0xff]  ;;  %s251_s24 = scalar_lea.vmem [#allocation7], %s1880_s18  ;;  %s3717_s9 = scalar_lea.hbm %s3768_s3, %s1890_s29 }
  0x52   : > { %v2976_v5 = vand.u32 4294901760, %v315_v2  ;;  %v312_v8 = vld [vmem:[%s2963_s5 + $0x50] sm:$0xff]  ;;  %v2981_v9 = vand.u32 4294901760, %v314_v6  ;;  %v2983_v10 = vand.u32 4294901760, %v313_v7  ;;  %v311_v12 = vld [vmem:[%s2963_s5 + $0x48] sm:$0xff]  ;;  %v310_v13 = vld [vmem:[%s2963_s5 + $0x40] sm:$0xff] }
  0x53   : > { %v2985_v11 = vand.u32 4294901760, %v312_v8  ;;  %2107 = vmatprep.subr.mxu0 %v2972_v3  ;;  %v2991_v14 = vsub.f32 %v317_v0, %v2972_v3  ;;  %v2994_v15 = vsub.f32 %v316_v1, %v2974_v4  ;;  %v2996_v16 = vand.u32 4294901760, %v311_v12  ;;  %v309_v18 = vld [vmem:[%s2963_s5 + $0x38] sm:$0xff]  ;;  %v308_v25 = vld [vmem:[%s2963_s5 + $0x30] sm:$0xff]  ;;  %v307_v35 = vld [vmem:[%s2963_s5 + $0x28] sm:$0xff]  ;;  %s283_s7 = scalar_lea.vmem [#allocation8], %s1880_s18 }
  0x54   : > { %v2999_v17 = vsub.f32 %v315_v2, %v2976_v5  ;;  %2108 = vmatpush3.msra.mxu0 %v2972_v3  ;;  %v3004_v19 = vsub.f32 %v314_v6, %v2981_v9  ;;  %v3007_v20 = vsub.f32 %v313_v7, %v2983_v10  ;;  %v3019_v24 = vand.u32 4294901760, %v310_v13  ;;  %v306_v40 = vld [vmem:[%s2963_s5 + $0x20] sm:$0xff]  ;;  %v305_v48 = vld [vmem:[%s2963_s5 + $0x18] sm:$0xff]  ;;  %v304_v59 = vld [vmem:[%s2963_s5 + $0x10] sm:$0xff]  ;;  %s1734_s23 = sshll.u32 %s283_s7, 4  ;;  %s1719_s15 = scalar_lea.sflag [#allocation4], %s2952_s1  ;;  %s3712_s23 = int_to_ptr.vmem [resolvable:$true] %s1734_s23 }
  0x55   : > { %2109 = vmatprep.subr.mxu0 %v2974_v4  ;;  %v3011_v21 = vand.u32 4294901760, %v2991_v14  ;;  %v3014_v22 = vand.u32 4294901760, %v2994_v15  ;;  %v3026_v27 = vand.u32 4294901760, %v309_v18  ;;  %v3032_v29 = vsub.f32 %v312_v8, %v2985_v11  ;;  %v318_v49 = vld [vmem:[%s251_s24] sm:$0xff]  ;;  %v319_v54 = vld [vmem:[%s251_s24 + $0x8] sm:$0xff]  ;;  %s2695_s19 = scalar_lea.vmem %s3712_s23, 256 }
  0x56   : > { %v3017_v23 = vand.u32 4294901760, %v2999_v17  ;;  %2110 = vmatpush3.msra.mxu0 %v2974_v4  ;;  %v3024_v26 = vand.u32 4294901760, %v3004_v19  ;;  %v3029_v28 = vand.u32 4294901760, %v3007_v20  ;;  %v3043_v33 = vsub.f32 %v311_v12, %v2996_v16  ;;  %v303_v2 = vld [vmem:[%s2963_s5 + $0x8] sm:$0xff]  ;;  %p2696_p8 = scmp.ne.s32.totalorder %s3712_s23, %s2695_s19  ;;  %s2786_s22 = smov [#allocation8]  }
  0x57   : > { %2111 = vmatprep.subr.mxu0 %v2976_v5  ;;  %v425_v30 = vsub.f32 %v2991_v14, %v3011_v21  ;;  %v432_v31 = vsub.f32 %v2994_v15, %v3014_v22  ;;  %v3046_v34 = vand.u32 4294901760, %v308_v25  ;;  %v3053_v39 = vand.u32 4294901760, %v3032_v29  ;;  %s2699_s8 = sshll.u32 %s2786_s22, 4  ;;  %s2700_s8 = int_to_ptr.vmem [resolvable:$false] %s2699_s8 }
  0x58   : > { %v439_v32 = vsub.f32 %v2999_v17, %v3017_v23  ;;  %2112 = vmatpush3.msra.mxu0 %v2976_v5  ;;  %v446_v38 = vsub.f32 %v3004_v19, %v3024_v26  ;;  %v453_v41 = vsub.f32 %v3007_v20, %v3029_v28  ;;  %v3060_v42 = vand.u32 4294901760, %v3043_v33  ;;  %p2697_p0 = pnand %p2696_p8, %p2864_p9  ;;  %s2701_s26 = scalar_lea.vmem %s2700_s8, 512 }
  0x59   : > { %2113 = vmatprep.subr.mxu0 %v2981_v9  ;;  %v426_v36 = vand.u32 4294901760, %v425_v30  ;;  %v433_v37 = vand.u32 4294901760, %v432_v31  ;;  %v3063_v43 = vsub.f32 %v310_v13, %v3019_v24  ;;  %v3066_v45 = vand.u32 4294901760, %v307_v35  ;;  %p2702_p4 = scmp.lt.s32.totalorder %s3712_s23, %s2700_s8  ;;  %p2703_p10 = scmp.lt.s32.totalorder %s2701_s26, %s2695_s19 }
  0x5a   : > { %2114 = vmatpush3.msra.mxu0 %v2981_v9  ;;  %v440_v44 = vand.u32 4294901760, %v439_v32  ;;  %v3069_v46 = vsub.f32 %v309_v18, %v3026_v27  ;;  %v3072_v47 = vand.u32 4294901760, %v306_v40  ;;  %v447_v50 = vand.u32 4294901760, %v446_v38  ;;  %v302_v18 = vld [vmem:[%s2963_s5] sm:$0xff]  ;;  %p2698_p3 = pneg %p2697_p0 }
  0x5b   : > { %2115 = vmatprep.subr.mxu0 %v2983_v10  ;;  %2142 = vmatprep.subr.mxu1 %v426_v36  ;;  %v460_v51 = vsub.f32 %v3032_v29, %v3053_v39  ;;  %v3081_v52 = vand.u32 4294901760, %v3063_v43  ;;  %v3084_v53 = vsub.f32 %v308_v25, %v3046_v34  ;;  %v454_v55 = vand.u32 4294901760, %v453_v41  ;;  %p2704_p13 = por %p2703_p10, %p2702_p4 }
  0x5c   : > { %2116 = vmatpush3.msra.mxu0 %v2983_v10  ;;  %2143 = vmatpush3.msra.mxu1 %v426_v36  ;;  %v467_v56 = vsub.f32 %v3043_v33, %v3060_v42  ;;  %v3090_v57 = vand.u32 4294901760, %v305_v48  ;;  %v3093_v58 = vand.u32 4294901760, %v3069_v46  ;;  %v3097_v60 = vsub.f32 %v307_v35, %v3066_v45 }
  0x5d   : > { %2117 = vmatprep.subr.mxu0 %v2985_v11  ;;  %2144 = vmatprep.subr.mxu1 %v433_v37  ;;  %v3099_v61 = vand.u32 4294901760, %v318_v49  ;;  %v3102_v62 = vand.u32 4294901760, %v319_v54  ;;  %v461_v63 = vand.u32 4294901760, %v460_v51  ;;  %v474_v0 = vsub.f32 %v3063_v43, %v3081_v52  ;;  %p2705_p12 = pnand %p2704_p13, %p2698_p3 }
  0x5e   : > { %2118 = vmatpush3.msra.mxu0 %v2985_v11  ;;  %2145 = vmatpush3.msra.mxu1 %v433_v37  ;;  %v3108_v1 = vand.u32 4294901760, %v3084_v53  ;;  %v3112_v6 = vsub.f32 %v306_v40, %v3072_v47  ;;  %v468_v7 = vand.u32 4294901760, %v467_v56  ;;  %v3115_v8 = vand.u32 4294901760, %v304_v59 }
  0x5f   : > { %2119 = vmatprep.subr.mxu0 %v2996_v16  ;;  %2146 = vmatprep.subr.mxu1 %v440_v44  ;;  %v481_v12 = vsub.f32 %v3069_v46, %v3093_v58  ;;  %v3121_v13 = vand.u32 4294901760, %v3097_v60  ;;  %v3125_v25 = vsub.f32 %v318_v49, %v3099_v61  ;;  %v3128_v30 = vsub.f32 %v305_v48, %v3090_v57 }
  0x60   : > { %2120 = vmatpush3.msra.mxu0 %v2996_v16  ;;  %2147 = vmatpush3.msra.mxu1 %v440_v44  ;;  %v3131_v31 = vand.u32 4294901760, %v303_v2  ;;  %v3134_v32 = vsub.f32 %v319_v54, %v3102_v62  ;;  %v475_v35 = vand.u32 4294901760, %v474_v0  ;;  %v488_v36 = vsub.f32 %v3084_v53, %v3108_v1 }
  0x61   : > { %2121 = vmatprep.subr.mxu0 %v3019_v24  ;;  %2148 = vmatprep.subr.mxu1 %v447_v50  ;;  %v3140_v37 = vand.u32 4294901760, %v3112_v6  ;;  %v3143_v38 = vand.u32 4294901760, %v302_v18  ;;  %v3146_v40 = vsub.f32 %v304_v59, %v3115_v8  ;;  %v482_v41 = vand.u32 4294901760, %v481_v12 }
  0x62   : > { %2122 = vmatpush3.msra.mxu0 %v3019_v24  ;;  %2149 = vmatpush3.msra.mxu1 %v447_v50  ;;  %v495_v44 = vsub.f32 %v3097_v60, %v3121_v13  ;;  %v3773_v48 = vand.u32 4294901760, %v3125_v25  ;;  %v3153_v49 = vand.u32 4294901760, %v3128_v30  ;;  %v3772_v50 = vand.u32 4294901760, %v3134_v32 }
  0x63   : > { %2123 = vmatprep.subr.mxu0 %v3026_v27  ;;  %2150 = vmatprep.subr.mxu1 %v454_v55  ;;  %v3158_v51 = vsub.f32 %v303_v2, %v3131_v31  ;;  %v489_v54 = vand.u32 4294901760, %v488_v36  ;;  %v3165_v56 = vand.u32 4294901760, %v3146_v40  ;;  %v3168_v59 = vsub.f32 %v302_v18, %v3143_v38 }
  0x64   : > { %2124 = vmatpush3.msra.mxu0 %v3026_v27  ;;  %2151 = vmatpush3.msra.mxu1 %v454_v55  ;;  %v502_v55 = vsub.f32 %v3112_v6, %v3140_v37  ;;  %v404_v0 = vsub.f32 %v3125_v25, %v3773_v48  ;;  %v509_v2 = vsub.f32 %v3128_v30, %v3153_v49 }
  0x65   : > { %2125 = vmatprep.subr.mxu0 %v3046_v34  ;;  %2152 = vmatprep.subr.mxu1 %v461_v63  ;;  %v3181_v12 = vand.u32 4294901760, %v3158_v51  ;;  %v3188_v36 = vand.u32 4294901760, %v3168_v59 }
  0x66   : > { %2126 = vmatpush3.msra.mxu0 %v3046_v34  ;;  %2153 = vmatpush3.msra.mxu1 %v461_v63  ;;  %v496_v63 = vand.u32 4294901760, %v495_v44  ;;  %v503_v18 = vand.u32 4294901760, %v502_v55  ;;  %v510_v44 = vand.u32 4294901760, %v509_v2 }
  0x67   : > { %2127 = vmatprep.subr.mxu0 %v3066_v45  ;;  %2154 = vmatprep.subr.mxu1 %v468_v7  ;;  %v523_v55 = vsub.f32 %v3158_v51, %v3181_v12  ;;  %v530_v48 = vsub.f32 %v3168_v59, %v3188_v36 }
  0x68   : > { %2128 = vmatpush3.msra.mxu0 %v3066_v45  ;;  %2155 = vmatpush3.msra.mxu1 %v468_v7  ;;  %v414_v7 = vsub.f32 %v3134_v32, %v3772_v50 }
  0x69   : > { %2129 = vmatprep.subr.mxu0 %v3072_v47  ;;  %2156 = vmatprep.subr.mxu1 %v475_v35 }
  0x6a   : > { %2130 = vmatpush3.msra.mxu0 %v3072_v47  ;;  %2157 = vmatpush3.msra.mxu1 %v475_v35  ;;  %v516_v35 = vsub.f32 %v3146_v40, %v3165_v56  ;;  %v415_v50 = vand.u32 4294901760, %v414_v7 }
  0x6b   : > { %2131 = vmatprep.subr.mxu0 %v3090_v57  ;;  %2158 = vmatprep.subr.mxu1 %v482_v41 }
  0x6c   : > { %2132 = vmatpush3.msra.mxu0 %v3090_v57  ;;  %2159 = vmatpush3.msra.mxu1 %v482_v41  ;;  %v405_v41 = vand.u32 4294901760, %v404_v0  ;;  %v531_v0 = vand.u32 4294901760, %v530_v48 }
  0x6d   : > { %2133 = vmatprep.subr.mxu0 %v3115_v8  ;;  %2160 = vmatprep.subr.mxu1 %v489_v54 }
  0x6e   : > { %2134 = vmatpush3.msra.mxu0 %v3115_v8  ;;  %2161 = vmatpush3.msra.mxu1 %v489_v54  ;;  %v517_v54 = vand.u32 4294901760, %v516_v35 }
  0x6f   : > { %2135 = vmatprep.subr.mxu0 %v3131_v31  ;;  %2162 = vmatprep.subr.mxu1 %v496_v63 }
  0x70   : > { %2136 = vmatpush3.msra.mxu0 %v3131_v31  ;;  %2163 = vmatpush3.msra.mxu1 %v496_v63  ;;  %v524_v63 = vand.u32 4294901760, %v523_v55 }
  0x71   : > { %2137 = vmatprep.subr.mxu0 %v3143_v38  ;;  %2164 = vmatprep.subr.mxu1 %v503_v18 }
  0x72   : > { %2138 = vmatpush3.msra.mxu0 %v3143_v38  ;;  %2165 = vmatpush3.msra.mxu1 %v503_v18  ;;  %v295_v18 = vld [vmem:[%s2956_s21 + $0x48] sm:$0xff] }
  0x73   : > { %2139 = vmatprep.mubr.f32.mxu0 %v405_v41  ;;  %2166 = vmatprep.subr.mxu1 %v510_v44  ;;  %v3420_v41 = vand.u32 4294901760, %v295_v18 }
  0x74   : > { %2177 = vmatprep.subr.mxu0 %v2991_v14  ;;  %2140 = vmatmul.mubr.f32.vlgmr.msra.gmra.mxu0 %v415_v50 }
  0x75   : > { %2167 = vmatpush3.msra.mxu1 %v510_v44  ;;  %2178 = vmatpush3.msra.mxu0 %v2991_v14  ;;  %v3787_v14 = vand.u32 4294901760, %v3125_v25  ;;  %v294_v44 = vld [vmem:[%s2956_s21 + $0x40] sm:$0xff] }
  0x76   : > { %2168 = vmatprep.subr.mxu1 %v517_v54  ;;  %2179 = vmatprep.subr.mxu0 %v2994_v15 }
  0x77   : > { %2169 = vmatpush3.msra.mxu1 %v517_v54  ;;  %2180 = vmatpush3.msra.mxu0 %v2994_v15  ;;  %v3788_v15 = vand.u32 4294901760, %v3134_v32 }
  0x78   : > { %2170 = vmatprep.subr.mxu1 %v524_v63  ;;  %2181 = vmatprep.subr.mxu0 %v2999_v17 }
  0x79   : > { %2171 = vmatpush3.msra.mxu1 %v524_v63  ;;  %2182 = vmatpush3.msra.mxu0 %v2999_v17  ;;  %v3431_v63 = vsub.f32 %v295_v18, %v3420_v41 }
  0x7a   : > { %2172 = vmatprep.subr.mxu1 %v531_v0  ;;  %2183 = vmatprep.subr.mxu0 %v3004_v19 }
  0x7b   : > { %2173 = vmatpush3.msra.mxu1 %v531_v0  ;;  %2174 = vmatprep.mubr.f32.mxu1 %v3099_v61  ;;  %v3433_v0 = vand.u32 4294901760, %v294_v44 }
  0x7c   : > { %2184 = vmatpush3.msra.mxu0 %v3004_v19  ;;  %2175 = vmatmul.mubr.f32.vlgmr.msra.gmra.mxu1 %v3102_v62 }
  0x7d   : > { %2185 = vmatprep.subr.mxu0 %v3007_v20  ;;  %2212 = vmatprep.subr.mxu1 %v2972_v3 }
  0x7e   : > { %2186 = vmatpush3.msra.mxu0 %v3007_v20  ;;  %2213 = vmatpush3.msra.mxu1 %v2972_v3 }
  0x7f   : > { %2187 = vmatprep.subr.mxu0 %v3032_v29  ;;  %2214 = vmatprep.subr.mxu1 %v2974_v4 }
  0x80   : > { %2188 = vmatpush3.msra.mxu0 %v3032_v29  ;;  %2215 = vmatpush3.msra.mxu1 %v2974_v4 }
  0x81   : > { %2189 = vmatprep.subr.mxu0 %v3043_v33  ;;  %2216 = vmatprep.subr.mxu1 %v2976_v5 }
  0x82   : > { %2190 = vmatpush3.msra.mxu0 %v3043_v33  ;;  %2217 = vmatpush3.msra.mxu1 %v2976_v5 }
  0x83   : > { %2191 = vmatprep.subr.mxu0 %v3063_v43  ;;  %2218 = vmatprep.subr.mxu1 %v2981_v9 }
  0x84   : > { %2192 = vmatpush3.msra.mxu0 %v3063_v43  ;;  %2219 = vmatpush3.msra.mxu1 %v2981_v9 }
  0x85   : > { %2193 = vmatprep.subr.mxu0 %v3069_v46  ;;  %2220 = vmatprep.subr.mxu1 %v2983_v10 }
  0x86   : > { %2194 = vmatpush3.msra.mxu0 %v3069_v46  ;;  %2221 = vmatpush3.msra.mxu1 %v2983_v10 }
  0x87   : > { %2195 = vmatprep.subr.mxu0 %v3084_v53  ;;  %2222 = vmatprep.subr.mxu1 %v2985_v11 }
  0x88   : > { %2196 = vmatpush3.msra.mxu0 %v3084_v53  ;;  %2223 = vmatpush3.msra.mxu1 %v2985_v11 }
  0x89   : > { %2197 = vmatprep.subr.mxu0 %v3097_v60  ;;  %2224 = vmatprep.subr.mxu1 %v2996_v16 }
  0x8a   : > { %2198 = vmatpush3.msra.mxu0 %v3097_v60  ;;  %2225 = vmatpush3.msra.mxu1 %v2996_v16 }
  0x8b   : > { %2199 = vmatprep.subr.mxu0 %v3112_v6  ;;  %2226 = vmatprep.subr.mxu1 %v3019_v24 }
  0x8c   : > { %2200 = vmatpush3.msra.mxu0 %v3112_v6  ;;  %2227 = vmatpush3.msra.mxu1 %v3019_v24 }
  0x8d   : > { %2201 = vmatprep.subr.mxu0 %v3128_v30  ;;  %2228 = vmatprep.subr.mxu1 %v3026_v27 }
  0x8e   : > { %2202 = vmatpush3.msra.mxu0 %v3128_v30  ;;  %2229 = vmatpush3.msra.mxu1 %v3026_v27 }
  0x8f   : > { %2203 = vmatprep.subr.mxu0 %v3146_v40  ;;  %2230 = vmatprep.subr.mxu1 %v3046_v34 }
  0x90   : > { %2204 = vmatpush3.msra.mxu0 %v3146_v40  ;;  %2231 = vmatpush3.msra.mxu1 %v3046_v34 }
  0x91   : > { %2205 = vmatprep.subr.mxu0 %v3158_v51  ;;  %2232 = vmatprep.subr.mxu1 %v3066_v45 }
  0x92   : > { %2206 = vmatpush3.msra.mxu0 %v3158_v51  ;;  %2233 = vmatpush3.msra.mxu1 %v3066_v45  ;;  %v297_v51 = vld [vmem:[%s2956_s21 + $0x58] sm:$0xff] }
  0x93   : > { %2207 = vmatprep.subr.mxu0 %v3168_v59  ;;  %2234 = vmatprep.subr.mxu1 %v3072_v47 }
  0x94   : > { %2208 = vmatpush3.msra.mxu0 %v3168_v59  ;;  %2209 = vmatprep.mubr.f32.mxu0 %v3125_v25  ;;  %v296_v59 = vld [vmem:[%s2956_s21 + $0x50] sm:$0xff] }
  0x95   : > { %2235 = vmatpush3.msra.mxu1 %v3072_v47  ;;  %2210 = vmatmul.mubr.f32.vlgmr.msra.gmra.mxu0 %v3134_v32  ;;  %v3406_v7 = vand.u32 4294901760, %v296_v59 }
  0x96   : > { %2236 = vmatprep.subr.mxu1 %v3090_v57  ;;  %2247 = vmatprep.subr.mxu0 %v3011_v21 }
  0x97   : > { %2237 = vmatpush3.msra.mxu1 %v3090_v57  ;;  %2248 = vmatpush3.msra.mxu0 %v3011_v21 }
  0x98   : > { %2238 = vmatprep.subr.mxu1 %v3115_v8  ;;  %2249 = vmatprep.subr.mxu0 %v3014_v22 }
  0x99   : > { %2239 = vmatpush3.msra.mxu1 %v3115_v8  ;;  %2250 = vmatpush3.msra.mxu0 %v3014_v22 }
  0x9a   : > { %2240 = vmatprep.subr.mxu1 %v3131_v31  ;;  %2251 = vmatprep.subr.mxu0 %v3017_v23 }
  0x9b   : > { %2241 = vmatpush3.msra.mxu1 %v3131_v31  ;;  %2252 = vmatpush3.msra.mxu0 %v3017_v23 }
  0x9c   : > { %2242 = vmatprep.subr.mxu1 %v3143_v38  ;;  %2253 = vmatprep.subr.mxu0 %v3024_v26 }
  0x9d   : > { %2243 = vmatpush3.msra.mxu1 %v3143_v38  ;;  %2244 = vmatprep.mubr.f32.mxu1 %v3787_v14  ;;  %v293_v14 = vld [vmem:[%s2956_s21 + $0x38] sm:$0xff] }
  0x9e   : > { %2254 = vmatpush3.msra.mxu0 %v3024_v26  ;;  %2245 = vmatmul.mubr.f32.vlgmr.msra.gmra.mxu1 %v3788_v15 }
  0x9f   : > { %2255 = vmatprep.subr.mxu0 %v3029_v28  ;;  %2282 = vmatprep.subr.mxu1 %v2972_v3 }
  0xa0   : > { %2256 = vmatpush3.msra.mxu0 %v3029_v28  ;;  %2283 = vmatpush3.msra.mxu1 %v2972_v3  ;;  %v301_v3 = vld [vmem:[%s2956_s21 + $0x78] sm:$0xff] }
  0xa1   : > { %2257 = vmatprep.subr.mxu0 %v3053_v39  ;;  %2284 = vmatprep.subr.mxu1 %v2974_v4 }
  0xa2   : > { %2258 = vmatpush3.msra.mxu0 %v3053_v39  ;;  %2285 = vmatpush3.msra.mxu1 %v2974_v4  ;;  %v300_v4 = vld [vmem:[%s2956_s21 + $0x70] sm:$0xff] }
  0xa3   : > { %2259 = vmatprep.subr.mxu0 %v3060_v42  ;;  %2286 = vmatprep.subr.mxu1 %v2976_v5 }
  0xa4   : > { %2260 = vmatpush3.msra.mxu0 %v3060_v42  ;;  %2287 = vmatpush3.msra.mxu1 %v2976_v5  ;;  %v299_v5 = vld [vmem:[%s2956_s21 + $0x68] sm:$0xff] }
  0xa5   : > { %2261 = vmatprep.subr.mxu0 %v3081_v52  ;;  %2288 = vmatprep.subr.mxu1 %v2981_v9 }
  0xa6   : > { %2262 = vmatpush3.msra.mxu0 %v3081_v52  ;;  %2289 = vmatpush3.msra.mxu1 %v2981_v9  ;;  %v3341_v9 = vand.u32 4294901760, %v301_v3 }
  0xa7   : > { %2263 = vmatprep.subr.mxu0 %v3093_v58  ;;  %2290 = vmatprep.subr.mxu1 %v2983_v10 }
  0xa8   : > { %2264 = vmatpush3.msra.mxu0 %v3093_v58  ;;  %2291 = vmatpush3.msra.mxu1 %v2983_v10  ;;  %v3343_v10 = vand.u32 4294901760, %v300_v4  ;;  %v3351_v19 = vsub.f32 %v301_v3, %v3341_v9 }
  0xa9   : > { %2265 = vmatprep.subr.mxu0 %v3108_v1  ;;  %2292 = vmatprep.subr.mxu1 %v2985_v11 }
  0xaa   : > { %2266 = vmatpush3.msra.mxu0 %v3108_v1  ;;  %2293 = vmatpush3.msra.mxu1 %v2985_v11  ;;  %v3345_v11 = vand.u32 4294901760, %v299_v5  ;;  %v3354_v20 = vsub.f32 %v300_v4, %v3343_v10  ;;  %v3365_v23 = vand.u32 4294901760, %v3351_v19  ;;  %v3441_v4 = vand.u32 4294901760, %v3431_v63 }
  0xab   : > { %2267 = vmatprep.subr.mxu0 %v3121_v13  ;;  %2294 = vmatprep.subr.mxu1 %v2996_v16 }
  0xac   : > { %2268 = vmatpush3.msra.mxu0 %v3121_v13  ;;  %2295 = vmatpush3.msra.mxu1 %v2996_v16  ;;  %v298_v16 = vld [vmem:[%s2956_s21 + $0x60] sm:$0xff]  ;;  %v3357_v21 = vsub.f32 %v299_v5, %v3345_v11  ;;  %v1129_v28 = vsub.f32 %v3351_v19, %v3365_v23  ;;  %v3444_v5 = vsub.f32 %v294_v44, %v3433_v0 }
  0xad   : > { %2269 = vmatprep.subr.mxu0 %v3140_v37  ;;  %2296 = vmatprep.subr.mxu1 %v3019_v24  ;;  %v3348_v17 = vand.u32 4294901760, %v298_v16 }
  0xae   : > { %2270 = vmatpush3.msra.mxu0 %v3140_v37  ;;  %2297 = vmatpush3.msra.mxu1 %v3019_v24  ;;  %v3368_v24 = vand.u32 4294901760, %v3354_v20  ;;  %v3371_v26 = vand.u32 4294901760, %v3357_v21 }
  0xaf   : > { %2271 = vmatprep.subr.mxu0 %v3153_v49  ;;  %2298 = vmatprep.subr.mxu1 %v3026_v27  ;;  %v3361_v22 = vsub.f32 %v298_v16, %v3348_v17  ;;  %v3447_v16 = vand.u32 4294901760, %v293_v14 }
  0xb0   : > { %2272 = vmatpush3.msra.mxu0 %v3153_v49  ;;  %2299 = vmatpush3.msra.mxu1 %v3026_v27  ;;  %v1136_v29 = vsub.f32 %v3354_v20, %v3368_v24  ;;  %v1143_v33 = vsub.f32 %v3357_v21, %v3371_v26 }
  0xb1   : > { %2273 = vmatprep.subr.mxu0 %v3165_v56  ;;  %2300 = vmatprep.subr.mxu1 %v3046_v34  ;;  %v3375_v27 = vand.u32 4294901760, %v3361_v22 }
  0xb2   : > { %2274 = vmatpush3.msra.mxu0 %v3165_v56  ;;  %2301 = vmatpush3.msra.mxu1 %v3046_v34  ;;  %v1130_v34 = vand.u32 4294901760, %v1129_v28  ;;  %v1137_v39 = vand.u32 4294901760, %v1136_v29  ;;  %v1144_v43 = vand.u32 4294901760, %v1143_v33  ;;  %v3400_v56 = vand.u32 4294901760, %v297_v51  ;;  %v292_v28 = vld [vmem:[%s2956_s21 + $0x30] sm:$0xff] }
  0xb3   : > { %2275 = vmatprep.subr.mxu0 %v3181_v12  ;;  %2302 = vmatprep.subr.mxu1 %v3066_v45  ;;  %v1150_v42 = vsub.f32 %v3361_v22, %v3375_v27  ;;  %v1171_v33 = vsub.f32 %v3431_v63, %v3441_v4 }
  0xb4   : > { %2276 = vmatpush3.msra.mxu0 %v3181_v12  ;;  %2303 = vmatpush3.msra.mxu1 %v3066_v45  ;;  %v3404_v2 = vsub.f32 %v297_v51, %v3400_v56 }
  0xb5   : > { %2277 = vmatprep.subr.mxu0 %v3188_v36  ;;  %2304 = vmatprep.subr.mxu1 %v3072_v47  ;;  %v1151_v45 = vand.u32 4294901760, %v1150_v42  ;;  %v3459_v42 = vsub.f32 %v293_v14, %v3447_v16 }
  0xb6   : > { %2278 = vmatpush3.msra.mxu0 %v3188_v36  ;;  %2279 = vmatprep.mubr.f32.mxu0 %v3099_v61  ;;  %v3415_v35 = vand.u32 4294901760, %v3404_v2  ;;  %v3418_v36 = vsub.f32 %v296_v59, %v3406_v7  ;;  %v287_v59 = vld [vmem:[%s2956_s21 + $0x8] sm:$0xff] }
  0xb7   : > { %2305 = vmatpush3.msra.mxu1 %v3072_v47  ;;  %2280 = vmatmul.mubr.f32.vlgmr.msra.gmra.mxu0 %v3102_v62 }
  0xb8   : > { %2306 = vmatprep.subr.mxu1 %v3090_v57  ;;  %2314 = vmatprep.mubr.f32.mxu1 %v3099_v61  ;;  %v1157_v55 = vsub.f32 %v3404_v2, %v3415_v35  ;;  %v3428_v54 = vand.u32 4294901760, %v3418_v36 }
  0xb9   : > { %2307 = vmatpush3.msra.mxu1 %v3090_v57  ;;  %2317 = vmatprep.subr.mxu0 %v3341_v9 }
  0xba   : > { %2308 = vmatprep.subr.mxu1 %v3115_v8  ;;  %2318 = vmatpush3.msra.mxu0 %v3341_v9  ;;  %v1158_v15 = vand.u32 4294901760, %v1157_v55  ;;  %v1164_v3 = vsub.f32 %v3418_v36, %v3428_v54  ;;  %v3520_v55 = vand.u32 4294901760, %v287_v59 }
  0xbb   : > { %2309 = vmatpush3.msra.mxu1 %v3115_v8  ;;  %2319 = vmatprep.subr.mxu0 %v3343_v10 }
  0xbc   : > { %2310 = vmatprep.subr.mxu1 %v3131_v31  ;;  %2320 = vmatpush3.msra.mxu0 %v3343_v10  ;;  %v1165_v29 = vand.u32 4294901760, %v1164_v3 }
  0xbd   : > { %2311 = vmatpush3.msra.mxu1 %v3131_v31  ;;  %2321 = vmatprep.subr.mxu0 %v3345_v11 }
  0xbe   : > { %2312 = vmatprep.subr.mxu1 %v3143_v38  ;;  %2322 = vmatpush3.msra.mxu0 %v3345_v11 }
  0xbf   : > { %2313 = vmatpush3.msra.mxu1 %v3143_v38  ;;  %2323 = vmatprep.subr.mxu0 %v3348_v17 }
  0xc0   : > { %2315 = vmatmul.mubr.f32.vlgmr.msra.gmra.mxu1 %v3102_v62  ;;  %2324 = vmatpush3.msra.mxu0 %v3348_v17 }
  0xc1   : > { %2352 = vmatprep.subr.mxu1 %v1130_v34  ;;  %2325 = vmatprep.subr.mxu0 %v3400_v56 }
  0xc2   : > { %2353 = vmatpush3.msra.mxu1 %v1130_v34  ;;  %2326 = vmatpush3.msra.mxu0 %v3400_v56  ;;  %v3454_v34 = vand.u32 4294901760, %v3444_v5 }
  0xc3   : > { %2354 = vmatprep.subr.mxu1 %v1137_v39  ;;  %2327 = vmatprep.subr.mxu0 %v3406_v7 }
  0xc4   : > { %2355 = vmatpush3.msra.mxu1 %v1137_v39  ;;  %2328 = vmatpush3.msra.mxu0 %v3406_v7  ;;  %v3456_v39 = vand.u32 4294901760, %v292_v28 }
  0xc5   : > { %2356 = vmatprep.subr.mxu1 %v1144_v43  ;;  %2329 = vmatprep.subr.mxu0 %v3420_v41 }
  0xc6   : > { %2357 = vmatpush3.msra.mxu1 %v1144_v43  ;;  %2330 = vmatpush3.msra.mxu0 %v3420_v41  ;;  %v291_v43 = vld [vmem:[%s2956_s21 + $0x28] sm:$0xff] }
  0xc7   : > { %2358 = vmatprep.subr.mxu1 %v1151_v45  ;;  %2331 = vmatprep.subr.mxu0 %v3433_v0 }
  0xc8   : > { %2359 = vmatpush3.msra.mxu1 %v1151_v45  ;;  %2332 = vmatpush3.msra.mxu0 %v3433_v0  ;;  %v1172_v45 = vand.u32 4294901760, %v1171_v33 }
  0xc9   : > { %2360 = vmatprep.subr.mxu1 %v1158_v15  ;;  %2333 = vmatprep.subr.mxu0 %v3447_v16 }
  0xca   : > { %2361 = vmatpush3.msra.mxu1 %v1158_v15  ;;  %2334 = vmatpush3.msra.mxu0 %v3447_v16  ;;  %v286_v15 = vld [vmem:[%s2956_s21] sm:$0xff] }
  0xcb   : > { %2362 = vmatprep.subr.mxu1 %v1165_v29  ;;  %2335 = vmatprep.subr.mxu0 %v3456_v39  ;;  %v3533_v33 = vand.u32 4294901760, %v286_v15 }
  0xcc   : > { %2363 = vmatpush3.msra.mxu1 %v1165_v29  ;;  %2336 = vmatpush3.msra.mxu0 %v3456_v39  ;;  %v3531_v29 = vsub.f32 %v287_v59, %v3520_v55 }
  0xcd   : > { %2364 = vmatprep.subr.mxu1 %v1172_v45 }
  0xce   : > { %2365 = vmatpush3.msra.mxu1 %v1172_v45 }
 0x134   : > { %v2141_v46 = vpop.f32.mrf.mxu0 }
 0x136   : > { %v407_v47 = vpop.f32.mrf.mxu0 }
 0x13c   : > { %v2176_v52 = vpop.f32.mrf.mxu1 }
 0x13d   : > { %v575_v62 = vadd.f32 %v2176_v52, %v2141_v46  ;;  %v1178_v46 = vsub.f32 %v3444_v5, %v3454_v34  ;;  %v3468_v52 = vand.u32 4294901760, %v291_v43 }
 0x13e   : > { %v568_v57 = vpop.f32.mrf.mxu1 }
 0x13f   : > { %v569_v1 = vadd.f32 %v568_v57, %v407_v47  ;;  %v3466_v47 = vsub.f32 %v292_v28, %v3456_v39  ;;  %v290_v57 = vld [vmem:[%s2956_s21 + $0x20] sm:$0xff]  ;;  %2337 = vmatprep.subr.mxu0 %v3468_v52 }
 0x140   : > { %2338 = vmatpush3.msra.mxu0 %v3468_v52 }
 0x155   : > { %v2211_v53 = vpop.f32.mrf.mxu0 }
 0x156   : > { %v686_v8 = vadd.f32 %v2211_v53, %v575_v62  ;;  %v3472_v53 = vand.u32 4294901760, %v3459_v42  ;;  %v3482_v62 = vand.u32 4294901760, %v290_v57 }
 0x157   : > { %v678_v58 = vpop.f32.mrf.mxu0 }
 0x158   : > { %v679_v13 = vadd.f32 %v678_v58, %v569_v1  ;;  %v1179_v58 = vand.u32 4294901760, %v1178_v46  ;;  %v1185_v1 = vsub.f32 %v3459_v42, %v3472_v53  ;;  %2339 = vmatprep.subr.mxu0 %v3482_v62  ;;  %v3541_v46 = vand.u32 4294901760, %v3531_v29 }
 0x159   : > { %2340 = vmatpush3.msra.mxu0 %v3482_v62 }
 0x15a   : > { %2366 = vmatprep.subr.mxu1 %v1179_v58 }
 0x15b   : > { %2367 = vmatpush3.msra.mxu1 %v1179_v58 }
 0x15e   : > { %v2246_v60 = vpop.f32.mrf.mxu1 }
 0x15f   : > { %v783_v30 = vadd.f32 %v2246_v60, %v686_v8  ;;  %v3477_v60 = vand.u32 4294901760, %v3466_v47 }
 0x160   : > { %v774_v6 = vpop.f32.mrf.mxu1 }
 0x161   : > { %v775_v31 = vadd.f32 %v774_v6, %v679_v13  ;;  %v289_v6 = vld [vmem:[%s2956_s21 + $0x18] sm:$0xff]  ;;  %v1192_v8 = vsub.f32 %v3466_v47, %v3477_v60 }
 0x177   : > { %v2281_v61 = vpop.f32.mrf.mxu0 }
 0x178   : > { %v908_v37 = vadd.f32 %v2281_v61, %v783_v30  ;;  %v3480_v61 = vsub.f32 %v291_v43, %v3468_v52  ;;  %v3497_v30 = vand.u32 4294901760, %v289_v6 }
 0x179   : > { %v901_v25 = vpop.f32.mrf.mxu0 }
 0x17a   : > { %v902_v38 = vadd.f32 %v901_v25, %v775_v31  ;;  %v3492_v13 = vand.u32 4294901760, %v3480_v61  ;;  %v3495_v25 = vsub.f32 %v290_v57, %v3482_v62  ;;  %v1186_v31 = vand.u32 4294901760, %v1185_v1  ;;  %2341 = vmatprep.subr.mxu0 %v3497_v30 }
 0x17b   : > { %2342 = vmatpush3.msra.mxu0 %v3497_v30  ;;  %v3544_v57 = vsub.f32 %v286_v15, %v3533_v33  ;;  %v1227_v1 = vsub.f32 %v3531_v29, %v3541_v46 }
 0x17c   : > { %2368 = vmatprep.subr.mxu1 %v1186_v31 }
 0x17d   : > { %2369 = vmatpush3.msra.mxu1 %v1186_v31  ;;  %v1228_v31 = vand.u32 4294901760, %v1227_v1 }
 0x180   : > { %v2316_v32 = vpop.f32.mrf.mxu1 }
 0x181   : > { %v3390_v48 = vadd.f32 %v2316_v32, %v908_v37  ;;  %v288_v32 = vld [vmem:[%s2956_s21 + $0x10] sm:$0xff]  ;;  %v1193_v37 = vand.u32 4294901760, %v1192_v8 }
 0x182   : > { %v994_v40 = vpop.f32.mrf.mxu1  ;;  %v3511_v51 = vand.u32 4294901760, %v288_v32 }
 0x183   : > { %v3392_v49 = vadd.f32 %v994_v40, %v902_v38  ;;  %vm1005_vm1 = vcmp.eq.f32.partialorder %v3390_v48, 0.0  ;;  %v1199_v38 = vsub.f32 %v3480_v61, %v3492_v13  ;;  %v3505_v40 = vand.u32 4294901760, %v3495_v25  ;;  %2370 = vmatprep.subr.mxu1 %v1193_v37 }
 0x184   : > { %v1007_v12 = vsel %vm1005_vm1, -3.4028235e+38, %v3390_v48  ;;  %v3524_v14 = vsub.f32 %v288_v32, %v3511_v51  ;;  %2343 = vmatprep.subr.mxu0 %v3511_v51  ;;  %2371 = vmatpush3.msra.mxu1 %v1193_v37 }
 0x185   : > { %vm1004_vm0 = vcmp.eq.f32.partialorder %v3392_v49, 0.0  ;;  %v1206_v18 = vsub.f32 %v3495_v25, %v3505_v40  ;;  %2344 = vmatpush3.msra.mxu0 %v3511_v51 }
 0x186   : > { %v1006_v50 = vsel %vm1004_vm0, -3.4028235e+38, %v3392_v49  ;;  %v3537_v43 = vand.u32 4294901760, %v3524_v14  ;;  %2345 = vmatprep.subr.mxu0 %v3520_v55 }
 0x187   : > { %1008 = vmax.xlane.f32.xlu0 %v1006_v50  ;;  %v3508_v50 = vsub.f32 %v289_v6, %v3497_v30  ;;  %v1207_v3 = vand.u32 4294901760, %v1206_v18  ;;  %2346 = vmatpush3.msra.mxu0 %v3520_v55  ;;  %v3553_v6 = vand.u32 4294901760, %v3544_v57 }
 0x188   : > { %v1220_v58 = vsub.f32 %v3524_v14, %v3537_v43  ;;  %2347 = vmatprep.subr.mxu0 %v3533_v33 }
 0x189   : > { %v3518_v44 = vand.u32 4294901760, %v3508_v50  ;;  %2348 = vmatpush3.msra.mxu0 %v3533_v33  ;;  %v1234_v32 = vsub.f32 %v3544_v57, %v3553_v6 }
 0x18a   : > { %v1221_v8 = vand.u32 4294901760, %v1220_v58  ;;  %2387 = vmatprep.subr.mxu0 %v3351_v19 }
 0x18b   : > { %1010 = vmax.xlane.f32.xlu0 %v1007_v12  ;;  %v1200_v12 = vand.u32 4294901760, %v1199_v38  ;;  %v1213_v28 = vsub.f32 %v3508_v50, %v3518_v44  ;;  %v1235_v37 = vand.u32 4294901760, %v1234_v32 }
 0x18d   : > { %2372 = vmatprep.subr.mxu1 %v1200_v12  ;;  %v1214_v45 = vand.u32 4294901760, %v1213_v28 }
 0x18e   : > { %2373 = vmatpush3.msra.mxu1 %v1200_v12 }
 0x18f   : > { %2374 = vmatprep.subr.mxu1 %v1207_v3 }
 0x190   : > { %2375 = vmatpush3.msra.mxu1 %v1207_v3 }
 0x191   : > { %2376 = vmatprep.subr.mxu1 %v1214_v45 }
 0x192   : > { %2377 = vmatpush3.msra.mxu1 %v1214_v45 }
 0x193   : > { %2378 = vmatprep.subr.mxu1 %v1221_v8 }
 0x194   : > { %2379 = vmatpush3.msra.mxu1 %v1221_v8 }
 0x195   : > { %2380 = vmatprep.subr.mxu1 %v1228_v31 }
 0x196   : > { %2381 = vmatpush3.msra.mxu1 %v1228_v31 }
 0x197   : > { %2382 = vmatprep.subr.mxu1 %v1235_v37 }
 0x198   : > { %2383 = vmatpush3.msra.mxu1 %v1235_v37 }
 0x199   : > { %2422 = vmatprep.subr.mxu1 %v3341_v9 }
 0x210   : > { %v1009_v38 = vpop.xlane.xlu0 %1008 }
 0x211   : > { %v1012_v59 = vsub.f32 %v3392_v49, %v1009_v38 }
 0x213   : > { %v1014_v12 = vmul.f32 1.442695, %v1012_v59 }
 0x214   : > { %v1011_v18 = vpop.xlane.xlu0 %1010 }
 0x215   : > { %2603 = vpow2.f32 %v1014_v12  ;;  %v1013_v15 = vsub.f32 %v3390_v48, %v1011_v18 }
 0x217   : > { %v1016_v3 = vmul.f32 1.442695, %v1013_v15 }
 0x219   : > { %2605 = vpow2.f32 %v1016_v3 }
 0x222   : > { %v2604_v28 = vpop.eup %2603 }
 0x223   : > { %v1018_v45 = vsel %vm1004_vm0, 0.0, %v2604_v28 }
 0x224   : > { %1020 = vadd.xlane.f32.xlu1 %v1018_v45  ;;  %v3564_v58 = vand.u32 4294901760, %v1018_v45 }
 0x226   : > { %v2606_v1 = vpop.eup %2605  ;;  %v1106_v8 = vsub.f32 %v1018_v45, %v3564_v58  ;;  %2384 = vmatprep.mubr.f32.mxu1 %v3564_v58 }
 0x227   : > { %v1019_v31 = vsel %vm1005_vm1, 0.0, %v2606_v1 }
 0x228   : > { %1022 = vadd.xlane.f32.xlu1 %v1019_v31  ;;  %v3570_v32 = vand.u32 4294901760, %v1019_v31  ;;  %v1107_v37 = vand.u32 4294901760, %v1106_v8 }
 0x22a   : > { %v3573_v38 = vsub.f32 %v1019_v31, %v3570_v32  ;;  %2385 = vmatmul.mubr.f32.vlgmr.msra.gmra.mxu1 %v3570_v32  ;;  %v1108_v49 = vsub.f32 %v1106_v8, %v1107_v37 }
 0x22b   : > { %2423 = vmatpush3.msra.mxu1 %v3341_v9  ;;  %2454 = vmatprep.mubr.f32.mxu1 %v1107_v37 }
 0x22c   : > { %v1117_v59 = vand.u32 4294901760, %v3573_v38  ;;  %2424 = vmatprep.subr.mxu1 %v3343_v10  ;;  %v1109_v12 = vand.u32 4294901760, %v1108_v49 }
 0x22d   : > { %2425 = vmatpush3.msra.mxu1 %v3343_v10 }
 0x22e   : > { %2426 = vmatprep.subr.mxu1 %v3345_v11  ;;  %2349 = vmatprep.mubr.f32.mxu0 %v1109_v12  ;;  %v1118_v48 = vsub.f32 %v3573_v38, %v1117_v59 }
 0x22f   : > { %2427 = vmatpush3.msra.mxu1 %v3345_v11 }
 0x230   : > { %2428 = vmatprep.subr.mxu1 %v3348_v17  ;;  %v1119_v18 = vand.u32 4294901760, %v1118_v48 }
 0x231   : > { %2429 = vmatpush3.msra.mxu1 %v3348_v17 }
 0x232   : > { %2430 = vmatprep.subr.mxu1 %v3400_v56  ;;  %2350 = vmatmul.mubr.f32.vlgmr.msra.gmra.mxu0 %v1119_v18 }
 0x233   : > { %2388 = vmatpush3.msra.mxu0 %v3351_v19  ;;  %2431 = vmatpush3.msra.mxu1 %v3400_v56 }
 0x234   : > { %2389 = vmatprep.subr.mxu0 %v3354_v20  ;;  %2419 = vmatprep.mubr.f32.mxu0 %v1106_v8 }
 0x235   : > { %2432 = vmatprep.subr.mxu1 %v3406_v7  ;;  %2390 = vmatpush3.msra.mxu0 %v3354_v20 }
 0x236   : > { %2433 = vmatpush3.msra.mxu1 %v3406_v7  ;;  %2391 = vmatprep.subr.mxu0 %v3357_v21 }
 0x237   : > { %2434 = vmatprep.subr.mxu1 %v3420_v41  ;;  %2392 = vmatpush3.msra.mxu0 %v3357_v21 }
 0x238   : > { %2435 = vmatpush3.msra.mxu1 %v3420_v41  ;;  %2393 = vmatprep.subr.mxu0 %v3361_v22 }
 0x239   : > { %2436 = vmatprep.subr.mxu1 %v3433_v0  ;;  %2394 = vmatpush3.msra.mxu0 %v3361_v22 }
 0x23a   : > { %2437 = vmatpush3.msra.mxu1 %v3433_v0  ;;  %2395 = vmatprep.subr.mxu0 %v3404_v2 }
 0x23b   : > { %2438 = vmatprep.subr.mxu1 %v3447_v16  ;;  %2396 = vmatpush3.msra.mxu0 %v3404_v2 }
 0x23c   : > { %2439 = vmatpush3.msra.mxu1 %v3447_v16  ;;  %2397 = vmatprep.subr.mxu0 %v3418_v36 }
 0x23d   : > { %2440 = vmatprep.subr.mxu1 %v3456_v39  ;;  %2398 = vmatpush3.msra.mxu0 %v3418_v36 }
 0x23e   : > { %2441 = vmatpush3.msra.mxu1 %v3456_v39  ;;  %2399 = vmatprep.subr.mxu0 %v3431_v63 }
 0x23f   : > { %2442 = vmatprep.subr.mxu1 %v3468_v52  ;;  %2400 = vmatpush3.msra.mxu0 %v3431_v63 }
 0x240   : > { %2443 = vmatpush3.msra.mxu1 %v3468_v52  ;;  %2401 = vmatprep.subr.mxu0 %v3444_v5 }
 0x241   : > { %2444 = vmatprep.subr.mxu1 %v3482_v62  ;;  %2402 = vmatpush3.msra.mxu0 %v3444_v5 }
 0x242   : > { %2445 = vmatpush3.msra.mxu1 %v3482_v62  ;;  %2403 = vmatprep.subr.mxu0 %v3459_v42 }
 0x243   : > { %2446 = vmatprep.subr.mxu1 %v3497_v30  ;;  %2404 = vmatpush3.msra.mxu0 %v3459_v42 }
 0x244   : > { %2447 = vmatpush3.msra.mxu1 %v3497_v30  ;;  %2405 = vmatprep.subr.mxu0 %v3466_v47 }
 0x245   : > { %2448 = vmatprep.subr.mxu1 %v3511_v51  ;;  %2406 = vmatpush3.msra.mxu0 %v3466_v47 }
 0x246   : > { %2449 = vmatpush3.msra.mxu1 %v3511_v51  ;;  %2407 = vmatprep.subr.mxu0 %v3480_v61 }
 0x247   : > { %2450 = vmatprep.subr.mxu1 %v3520_v55  ;;  %2408 = vmatpush3.msra.mxu0 %v3480_v61 }
 0x248   : > { %2451 = vmatpush3.msra.mxu1 %v3520_v55  ;;  %2409 = vmatprep.subr.mxu0 %v3495_v25 }
 0x249   : > { %2452 = vmatprep.subr.mxu1 %v3533_v33  ;;  %2410 = vmatpush3.msra.mxu0 %v3495_v25 }
 0x24a   : > { %2453 = vmatpush3.msra.mxu1 %v3533_v33  ;;  %2411 = vmatprep.subr.mxu0 %v3508_v50 }
 0x24b   : > { %2455 = vmatmul.mubr.f32.vlgmr.msra.gmra.mxu1 %v1117_v59  ;;  %2492 = vmatprep.subr.mxu1 %v3341_v9 }
 0x24c   : > { %2412 = vmatpush3.msra.mxu0 %v3508_v50  ;;  %2493 = vmatpush3.msra.mxu1 %v3341_v9 }
 0x24d   : > { %2524 = vmatprep.mubr.f32.mxu1 %v3564_v58  ;;  %2413 = vmatprep.subr.mxu0 %v3524_v14 }
 0x24e   : > { %2494 = vmatprep.subr.mxu1 %v3343_v10  ;;  %2414 = vmatpush3.msra.mxu0 %v3524_v14 }
 0x24f   : > { %2495 = vmatpush3.msra.mxu1 %v3343_v10  ;;  %2415 = vmatprep.subr.mxu0 %v3531_v29 }
 0x250   : > { %2496 = vmatprep.subr.mxu1 %v3345_v11  ;;  %2416 = vmatpush3.msra.mxu0 %v3531_v29 }
 0x251   : > { %2497 = vmatpush3.msra.mxu1 %v3345_v11  ;;  %2417 = vmatprep.subr.mxu0 %v3544_v57 }
 0x252   : > { %2498 = vmatprep.subr.mxu1 %v3348_v17  ;;  %2418 = vmatpush3.msra.mxu0 %v3544_v57 }
 0x253   : > { %2499 = vmatpush3.msra.mxu1 %v3348_v17  ;;  %2420 = vmatmul.mubr.f32.vlgmr.msra.gmra.mxu0 %v3573_v38 }
 0x254   : > { %2457 = vmatprep.subr.mxu0 %v3365_v23  ;;  %2500 = vmatprep.subr.mxu1 %v3400_v56 }
 0x255   : > { %2458 = vmatpush3.msra.mxu0 %v3365_v23  ;;  %2489 = vmatprep.mubr.f32.mxu0 %v3564_v58 }
 0x256   : > { %2501 = vmatpush3.msra.mxu1 %v3400_v56  ;;  %2459 = vmatprep.subr.mxu0 %v3368_v24 }
 0x257   : > { %2502 = vmatprep.subr.mxu1 %v3406_v7  ;;  %2460 = vmatpush3.msra.mxu0 %v3368_v24 }
 0x258   : > { %2503 = vmatpush3.msra.mxu1 %v3406_v7  ;;  %2461 = vmatprep.subr.mxu0 %v3371_v26 }
 0x259   : > { %2504 = vmatprep.subr.mxu1 %v3420_v41  ;;  %2462 = vmatpush3.msra.mxu0 %v3371_v26 }
 0x25a   : > { %2505 = vmatpush3.msra.mxu1 %v3420_v41  ;;  %2463 = vmatprep.subr.mxu0 %v3375_v27 }
 0x25b   : > { %2506 = vmatprep.subr.mxu1 %v3433_v0  ;;  %2464 = vmatpush3.msra.mxu0 %v3375_v27 }
 0x25c   : > { %2507 = vmatpush3.msra.mxu1 %v3433_v0  ;;  %2465 = vmatprep.subr.mxu0 %v3415_v35 }
 0x25d   : > { %2508 = vmatprep.subr.mxu1 %v3447_v16  ;;  %2466 = vmatpush3.msra.mxu0 %v3415_v35 }
 0x25e   : > { %2509 = vmatpush3.msra.mxu1 %v3447_v16  ;;  %2467 = vmatprep.subr.mxu0 %v3428_v54 }
 0x25f   : > { %2510 = vmatprep.subr.mxu1 %v3456_v39  ;;  %2468 = vmatpush3.msra.mxu0 %v3428_v54 }
 0x260   : > { %2511 = vmatpush3.msra.mxu1 %v3456_v39  ;;  %2469 = vmatprep.subr.mxu0 %v3441_v4 }
 0x261   : > { %2512 = vmatprep.subr.mxu1 %v3468_v52  ;;  %2470 = vmatpush3.msra.mxu0 %v3441_v4 }
 0x262   : > { %2513 = vmatpush3.msra.mxu1 %v3468_v52  ;;  %2471 = vmatprep.subr.mxu0 %v3454_v34 }
 0x263   : > { %2514 = vmatprep.subr.mxu1 %v3482_v62  ;;  %2472 = vmatpush3.msra.mxu0 %v3454_v34 }
 0x264   : > { %2515 = vmatpush3.msra.mxu1 %v3482_v62  ;;  %2473 = vmatprep.subr.mxu0 %v3472_v53 }
 0x265   : > { %2516 = vmatprep.subr.mxu1 %v3497_v30  ;;  %2474 = vmatpush3.msra.mxu0 %v3472_v53 }
 0x266   : > { %2517 = vmatpush3.msra.mxu1 %v3497_v30  ;;  %2475 = vmatprep.subr.mxu0 %v3477_v60 }
 0x267   : > { %2518 = vmatprep.subr.mxu1 %v3511_v51  ;;  %2476 = vmatpush3.msra.mxu0 %v3477_v60 }
 0x268   : > { %2519 = vmatpush3.msra.mxu1 %v3511_v51  ;;  %2477 = vmatprep.subr.mxu0 %v3492_v13 }
 0x269   : > { %2520 = vmatprep.subr.mxu1 %v3520_v55  ;;  %2478 = vmatpush3.msra.mxu0 %v3492_v13 }
 0x26a   : > { %2521 = vmatpush3.msra.mxu1 %v3520_v55  ;;  %2479 = vmatprep.subr.mxu0 %v3505_v40 }
 0x26b   : > { %2522 = vmatprep.subr.mxu1 %v3533_v33  ;;  %2480 = vmatpush3.msra.mxu0 %v3505_v40 }
 0x26c   : > { %2523 = vmatpush3.msra.mxu1 %v3533_v33  ;;  %2481 = vmatprep.subr.mxu0 %v3518_v44 }
 0x26d   : > { %2525 = vmatmul.mubr.f32.vlgmr.msra.gmra.mxu1 %v3570_v32  ;;  %2482 = vmatpush3.msra.mxu0 %v3518_v44 }
 0x26e   : > { %2483 = vmatprep.subr.mxu0 %v3537_v43 }
 0x26f   : > { %2484 = vmatpush3.msra.mxu0 %v3537_v43 }
 0x270   : > { %2485 = vmatprep.subr.mxu0 %v3541_v46 }
 0x271   : > { %2486 = vmatpush3.msra.mxu0 %v3541_v46 }
 0x272   : > { %2487 = vmatprep.subr.mxu0 %v3553_v6 }
 0x273   : > { %2488 = vmatpush3.msra.mxu0 %v3553_v6 }
 0x274   : > { %2490 = vmatmul.mubr.f32.vlgmr.msra.gmra.mxu0 %v3570_v32 }
 0x2ad   : > { %v1021_v9 = vpop.xlane.xlu1 %1020 }
 0x2ae   : > { %vm1708_vm3 = vcmp.eq.f32.partialorder %v1021_v9, 0.0 }
 0x2b1   : > { %v1023_v11 = vpop.xlane.xlu1 %1022 }
 0x2b2   : > { %2607 = vrcp.f32 %v1023_v11  ;;  %vm1709_vm2 = vcmp.eq.f32.partialorder %v1023_v11, 0.0 }
 0x2b3   : > { %2609 = vrcp.f32 %v1021_v9 }
 0x2bf   : > { %v2608_v41 = vpop.eup %2607 }
 0x2c0   : > { %v2610_v4 = vpop.eup %2609  ;;  %v1713_v34 = vsel %vm1709_vm2, 0.0, %v2608_v41 }
 0x2c1   : > { %v1712_v52 = vsel %vm1708_vm3, 0.0, %v2610_v4 }
 0x2ea   : > { %v2386_v17 = vpop.f32.mrf.mxu1 }
 0x2ec   : > { %v1272_v21 = vpop.f32.mrf.mxu1 }
 0x2f2   : > { %v2351_v10 = vpop.f32.mrf.mxu0 }
 0x2f3   : > { %v1279_v22 = vadd.f32 %v2386_v17, %v2351_v10 }
 0x2f4   : > { %v1111_v19 = vpop.f32.mrf.mxu0 }
 0x2f5   : > { %v1273_v26 = vadd.f32 %v1272_v21, %v1111_v19 }
 0x30b   : > { %v2456_v23 = vpop.f32.mrf.mxu1 }
 0x30d   : > { %v1478_v2 = vpop.f32.mrf.mxu1 }
 0x313   : > { %v2421_v20 = vpop.f32.mrf.mxu0 }
 0x314   : > { %v1390_v27 = vadd.f32 %v2421_v20, %v1279_v22 }
 0x315   : > { %v1382_v24 = vpop.f32.mrf.mxu0 }
 0x316   : > { %v1383_v56 = vadd.f32 %v1382_v24, %v1273_v26  ;;  %v1487_v7 = vadd.f32 %v2456_v23, %v1390_v27 }
 0x318   : > { %v1479_v63 = vadd.f32 %v1478_v2, %v1383_v56 }
 0x32d   : > { %v2526_v35 = vpop.f32.mrf.mxu1 }
 0x32f   : > { %v1698_v39 = vpop.f32.mrf.mxu1 }
 0x334   : > { %v2491_v36 = vpop.f32.mrf.mxu0 }
 0x335   : > { %v1612_v54 = vadd.f32 %v2491_v36, %v1487_v7 }
 0x336   : > { %v1605_v0 = vpop.f32.mrf.mxu0 }
 0x337   : > { %v1705_v5 = vadd.f32 %v2526_v35, %v1612_v54  ;;  %v1606_v16 = vadd.f32 %v1605_v0, %v1479_v63 }
 0x339   : > { %v1715_v42 = vmul.f32 %v1713_v34, %v1705_v5  ;;  %v1699_v47 = vadd.f32 %v1698_v39, %v1606_v16 }
 0x33b   : > { %1717 = vst [vmem:[%s283_s7 + $0x8] sm:$0xff] %v1715_v42  ;;  %v1714_v53 = vmul.f32 %v1712_v52, %v1699_v47 }
 0x33d   : > { %1716 = vst [vmem:[%s283_s7] sm:$0xff] %v1714_v53 }
 0x33e   : > { %2708 = shalt.err (!%p2705_p12)
}
 0x33f   : > { %s2709_s6 = scalar_lea.hbm %s3717_s9, 256  ;;  %s2713_s20 = scalar_lea.hbm %s3768_s3, 512 }
 0x340   : > { %p2710_p5 = scmp.ne.s32.totalorder %s3717_s9, %s2709_s6  ;;  %p2714_p6 = scmp.lt.s32.totalorder %s3717_s9, %s3768_s3 }
 0x341   : > { %p2715_p7 = scmp.lt.s32.totalorder %s2713_s20, %s2709_s6 }
 0x342   : > { %p2711_p1 = pnand %p2710_p5, %p2864_p9 }
 0x343   : > { %p2716_p8 = por %p2715_p7, %p2714_p6 }
 0x344   : > { %p2712_p2 = pneg %p2711_p1 }
 0x346   : > { %p2717_p0 = pnand %p2716_p8, %p2712_p2 }
 0x348   : > { %2720 = shalt.err (!%p2717_p0)
}
 0x349   : > { %s2787_s11 = smov 128   ;;  %s2788_s5 = smov 8  }
 0x34a   : > { %2533 = dma.vmem_to_hbm [thread:$0]  (%p2864_p9), %s3712_s23, 256, %s3717_s9, %s1719_s15, %s2787_s11, %s2787_s11, %s2788_s5  }
 0x34b PF: > { %s1749_s18 = sand.u32 1, %s2759_s12   ;;  %p3789_p3 = scmp.ge.s32.totalorder %s2779_s17, 2 }
 0x34c   : > { %s1750_s24 = scalar_lea.sflag [#allocation4], %s1749_s18 }
 0x34d   : > { %p2546_p4 = pnand %p3789_p3, %p2871_p11 }
 0x34f   : > { %p2547_p10 = pneg %p2546_p4 }
 0x351   : > { %2754 = dma.done.wait (%p2547_p10), %s1750_s24, 256  }
 0x352   : > { %2756 = vsyncadd (%p2547_p10), %s1750_s24, 4294967040  ;;  %s22_s17 = sadd.s32 1, %s2779_s17   ;;  %s3790_s25 = sld [smem:[#allocation13_spill]] }
 0x353   : > { %p19_p13 = scmp.ge.s32.totalorder %s22_s17, 4   ;;  %s3791_s1 = sld [smem:[#allocation12_spill]] }
 0x354   : > { %s3792_s12 = smov %s2763_s13  ;;  %s3793_s13 = smov %s2767_s14 }
 0x355   : > { %s3795_s15 = smov %s2775_s16  ;;  %21 = sbr.rel (!%p19_p13) target bundleno = 11 (0xb), region = 101 }
 0x358   : > { %s3794_s14 = smov %s3790_s25 }
 0x359   : > { %s3796_s16 = smov %s3791_s1 }
 0x35a   :  { %1755 = vsyncpa [#allocation3], 1 }
 0x35b   :  { %1757 = vsyncpa [#allocation3 + $0x1], 1 }
 0x35c   :  { %1758 = vsyncpa [#allocation6], 1 }
 0x35d   :  { %1760 = vsyncpa [#allocation6 + $0x1], 1 }
 0x35e   :  { %1761 = vsyncpa [#allocation4], 1 }
 0x35f   :  { %1763 = vsyncpa [#allocation4 + $0x1], 1 }

</bundles_post_ra>
